<compile_context>
chip_gen: v7x
topology: tpu7x:2x2x1
jax: 0.10.0
libtpu: 0.0.40
codegen_flags: <defaults>
</compile_context>

<pallas_src>
import functools

import jax
import jax.numpy as jnp
from jax import lax
from jax.experimental import pallas as pl
from jax.experimental.pallas import tpu as pltpu


def _attn_kernel(q_ref, k_ref, v_ref, o_ref, *, heads, scale):
    # q_ref: (N, dim), k_ref / v_ref: (J, dim), o_ref: (N, dim)
    _, dim = q_ref.shape
    d = dim // heads

    # Fold the softmax scale into Q once.
    q = q_ref[...] * jnp.asarray(scale, dtype=q_ref.dtype)
    k = k_ref[...]
    v = v_ref[...]

    out_parts = []
    for h in range(heads):                       # static loop, unrolled at trace time
        lo = h * d
        qh = q[:, lo:lo + d]                     # (N, d)
        kh = k[:, lo:lo + d]                     # (J, d)
        vh = v[:, lo:lo + d]                     # (J, d)

        # scores (N, J): contract the last dims directly (no explicit k.T).
        s = lax.dot_general(qh, kh, (((1,), (1,)), ((), ())),
                            preferred_element_type=jnp.float32)

        # numerically-stable softmax over J, stats in f32
        m = jnp.max(s, axis=-1, keepdims=True)
        p = jnp.exp(s - m)
        denom = jnp.sum(p, axis=-1, keepdims=True)
        p = p * pl.reciprocal(denom, approx=True)

        # output (N, d): P @ V with f32 accumulation, P cast to V's dtype for the MXU.
        oh = lax.dot_general(p.astype(v.dtype), vh, (((1,), (0,)), ((), ())),
                             preferred_element_type=jnp.float32)
        out_parts.append(oh)

    # Assemble the lane-dense (N, dim) output tile and store it once.
    o = jnp.concatenate(out_parts, axis=-1) if heads > 1 else out_parts[0]
    o_ref[...] = o.astype(o_ref.dtype)


def broad_multi_head_attention(Q, K, V, *, dim, heads):
    """Q: (1, N, dim) (or (N, dim)), K/V: (B, J, dim) -> (B, N, dim)."""
    B, J, hd = K.shape
    assert hd == dim and dim % heads == 0
    N = Q.shape[-2]
    Q2 = Q.reshape(N, dim)                 # torch's Q.squeeze(); metadata-only
    scale = (dim / heads) ** (-0.5)

    # TODO(synk): for production FlowFormer sizes (N, J in the thousands) tile N
    # and J (flash-style online softmax) so the f32 score tile fits v7x VMEM.

    kernel = functools.partial(_attn_kernel, heads=heads, scale=scale)

    # Rough per-step VMEM need: double-buffered K/V + resident Q + out + f32 scores.
    itm = jnp.dtype(Q.dtype).itemsize
    vmem_est = (2 * 2 * J * dim * itm          # K, V double buffers
                + 2 * N * dim * itm            # Q (resident) + output buffer
                + heads * N * J * 4            # f32 score tiles
                + (2 << 20))                   # slack
    params = {"dimension_semantics": ("parallel",)}
    if vmem_est > (32 << 20):
        params["vmem_limit_bytes"] = min(int(vmem_est), 100 << 20)

    out = pl.pallas_call(
        kernel,
        out_shape=jax.ShapeDtypeStruct((B, N, dim), Q.dtype),
        grid=(B,),
        in_specs=[
            # Constant block index -> Q loaded from HBM once, stays VMEM-resident.
            pl.BlockSpec((N, dim), lambda b: (0, 0)),
            pl.BlockSpec((None, J, dim), lambda b: (b, 0, 0)),
            pl.BlockSpec((None, J, dim), lambda b: (b, 0, 0)),
        ],
        out_specs=pl.BlockSpec((None, N, dim), lambda b: (b, 0, 0)),
        compiler_params=pltpu.CompilerParams(**params),
    )(Q2, K, V)

    return out


if __name__ == "__main__":
    key = jax.random.PRNGKey(0)
    B, N, J, dim, heads = 2, 8, 16, 64, 4

    kq, kk, kv = jax.random.split(key, 3)
    Q = jax.random.normal(kq, (1, N, dim), dtype=jnp.float32)
    K = jax.random.normal(kk, (B, J, dim), dtype=jnp.float32)
    V = jax.random.normal(kv, (B, J, dim), dtype=jnp.float32)

    out = broad_multi_head_attention(Q, K, V, dim=dim, heads=heads)
    jax.block_until_ready(out)

    # pure-JAX reference (mirrors the PyTorch einsum path)
    d = dim // heads
    scale = (dim / heads) ** (-0.5)
    Qh = Q.reshape(N, heads, d).transpose(1, 0, 2)
    Kh = K.reshape(B, J, heads, d).transpose(0, 2, 1, 3)
    Vh = V.reshape(B, J, heads, d).transpose(0, 2, 1, 3)
    dots = jnp.einsum("hid,bhjd->bhij", Qh, Kh) * scale
    attn = jax.nn.softmax(dots, axis=-1)
    ref = jnp.einsum("bhij,bhjd->bhid", attn, Vh)
    ref = ref.transpose(0, 2, 1, 3).reshape(B, N, dim)

    assert out.shape == (B, N, dim)
    # tolerance covers the EUP approximate-reciprocal softmax normalization
    assert jnp.allclose(out, ref, atol=2e-2, rtol=2e-2), "mismatch vs reference"
    print("KERNEL_OK")
</pallas_src>

<mosaic_0001>
module attributes {stable_mosaic.version = 11 : i64} {
  func.func @_attn_kernel(%arg0: i32, %arg1: memref<8x64xf32, #tpu.memory_space<vmem>>, %arg2: memref<1x16x64xf32, #tpu.memory_space<vmem>>, %arg3: memref<1x16x64xf32, #tpu.memory_space<vmem>>, %arg4: memref<1x8x64xf32, #tpu.memory_space<vmem>>) attributes {dimension_semantics = [#tpu.dimension_semantics<parallel>], iteration_bounds = array<i64: 2>, scalar_prefetch = 0 : i64, scratch_operands = 0 : i64, tpu.core_type = #tpu.core_type<tc>, window_params = [{pipeline_mode = #tpu.pipeline_mode<synchronous>, transform_indices = @transform_0, window_bounds = array<i64: 8, 64>}, {transform_indices = @transform_1, window_bounds = array<i64: 1, 16, 64>}, {transform_indices = @transform_2, window_bounds = array<i64: 1, 16, 64>}, {transform_indices = @transform_3, window_bounds = array<i64: 1, 8, 64>}]} {
    %c0 = arith.constant 0 : index
    %c0_0 = arith.constant 0 : index
    %0 = vector.load %arg1[%c0, %c0_0] : memref<8x64xf32, #tpu.memory_space<vmem>>, vector<8x64xf32>
    %cst = arith.constant 2.500000e-01 : f32
    %1 = vector.broadcast %cst : f32 to vector<8x64xf32>
    %2 = arith.mulf %0, %1 : vector<8x64xf32>
    %c0_1 = arith.constant 0 : index
    %c0_2 = arith.constant 0 : index
    %c0_3 = arith.constant 0 : index
    %3 = vector.load %arg2[%c0_1, %c0_2, %c0_3] : memref<1x16x64xf32, #tpu.memory_space<vmem>>, vector<1x16x64xf32>
    %4 = vector.shape_cast %3 : vector<1x16x64xf32> to vector<16x64xf32>
    %c0_4 = arith.constant 0 : index
    %c0_5 = arith.constant 0 : index
    %c0_6 = arith.constant 0 : index
    %5 = vector.load %arg3[%c0_4, %c0_5, %c0_6] : memref<1x16x64xf32, #tpu.memory_space<vmem>>, vector<1x16x64xf32>
    %6 = vector.shape_cast %5 : vector<1x16x64xf32> to vector<16x64xf32>
    %7 = vector.extract_strided_slice %2 {offsets = [0, 0], sizes = [8, 16], strides = [1, 1]} : vector<8x64xf32> to vector<8x16xf32>
    %8 = vector.extract_strided_slice %4 {offsets = [0, 0], sizes = [16, 16], strides = [1, 1]} : vector<16x64xf32> to vector<16x16xf32>
    %9 = vector.extract_strided_slice %6 {offsets = [0, 0], sizes = [16, 16], strides = [1, 1]} : vector<16x64xf32> to vector<16x16xf32>
    %cst_7 = arith.constant dense<0.000000e+00> : vector<8x16xf32>
    %10 = tpu.matmul %7, %8, %cst_7 {dimension_numbers = #tpu.dot_dimension_numbers<[1], [1], [0], [0], [0, 0, 1, 0], [], []>} : vector<8x16xf32>, vector<16x16xf32>, vector<8x16xf32> -> vector<8x16xf32>
    %cst_8 = arith.constant dense<0xFF800000> : vector<8xf32>
    %11 = vector.multi_reduction <maximumf>, %10, %cst_8 [1] : vector<8x16xf32> to vector<8xf32>
    %12 = vector.shape_cast %11 : vector<8xf32> to vector<8x1xf32>
    %13 = vector.broadcast %12 : vector<8x1xf32> to vector<8x16xf32>
    %14 = arith.subf %10, %13 : vector<8x16xf32>
    %15 = math.exp %14 : vector<8x16xf32>
    %cst_9 = arith.constant dense<0.000000e+00> : vector<8xf32>
    %16 = vector.multi_reduction <add>, %15, %cst_9 [1] : vector<8x16xf32> to vector<8xf32>
    %17 = vector.shape_cast %16 : vector<8xf32> to vector<8x1xf32>
    %18 = tpu.reciprocal %17 {approx = true} : vector<8x1xf32> -> vector<8x1xf32>
    %19 = vector.broadcast %18 : vector<8x1xf32> to vector<8x16xf32>
    %20 = arith.mulf %15, %19 : vector<8x16xf32>
    %cst_10 = arith.constant dense<0.000000e+00> : vector<8x16xf32>
    %21 = tpu.matmul %20, %9, %cst_10 {dimension_numbers = #tpu.dot_dimension_numbers<[1], [0], [0], [1], [0, 0, 1, 1], [], []>} : vector<8x16xf32>, vector<16x16xf32>, vector<8x16xf32> -> vector<8x16xf32>
    %22 = vector.extract_strided_slice %2 {offsets = [0, 16], sizes = [8, 16], strides = [1, 1]} : vector<8x64xf32> to vector<8x16xf32>
    %23 = vector.extract_strided_slice %4 {offsets = [0, 16], sizes = [16, 16], strides = [1, 1]} : vector<16x64xf32> to vector<16x16xf32>
    %24 = vector.extract_strided_slice %6 {offsets = [0, 16], sizes = [16, 16], strides = [1, 1]} : vector<16x64xf32> to vector<16x16xf32>
    %cst_11 = arith.constant dense<0.000000e+00> : vector<8x16xf32>
    %25 = tpu.matmul %22, %23, %cst_11 {dimension_numbers = #tpu.dot_dimension_numbers<[1], [1], [0], [0], [0, 0, 1, 0], [], []>} : vector<8x16xf32>, vector<16x16xf32>, vector<8x16xf32> -> vector<8x16xf32>
    %cst_12 = arith.constant dense<0xFF800000> : vector<8xf32>
    %26 = vector.multi_reduction <maximumf>, %25, %cst_12 [1] : vector<8x16xf32> to vector<8xf32>
    %27 = vector.shape_cast %26 : vector<8xf32> to vector<8x1xf32>
    %28 = vector.broadcast %27 : vector<8x1xf32> to vector<8x16xf32>
    %29 = arith.subf %25, %28 : vector<8x16xf32>
    %30 = math.exp %29 : vector<8x16xf32>
    %cst_13 = arith.constant dense<0.000000e+00> : vector<8xf32>
    %31 = vector.multi_reduction <add>, %30, %cst_13 [1] : vector<8x16xf32> to vector<8xf32>
    %32 = vector.shape_cast %31 : vector<8xf32> to vector<8x1xf32>
    %33 = tpu.reciprocal %32 {approx = true} : vector<8x1xf32> -> vector<8x1xf32>
    %34 = vector.broadcast %33 : vector<8x1xf32> to vector<8x16xf32>
    %35 = arith.mulf %30, %34 : vector<8x16xf32>
    %cst_14 = arith.constant dense<0.000000e+00> : vector<8x16xf32>
    %36 = tpu.matmul %35, %24, %cst_14 {dimension_numbers = #tpu.dot_dimension_numbers<[1], [0], [0], [1], [0, 0, 1, 1], [], []>} : vector<8x16xf32>, vector<16x16xf32>, vector<8x16xf32> -> vector<8x16xf32>
    %37 = vector.extract_strided_slice %2 {offsets = [0, 32], sizes = [8, 16], strides = [1, 1]} : vector<8x64xf32> to vector<8x16xf32>
    %38 = vector.extract_strided_slice %4 {offsets = [0, 32], sizes = [16, 16], strides = [1, 1]} : vector<16x64xf32> to vector<16x16xf32>
    %39 = vector.extract_strided_slice %6 {offsets = [0, 32], sizes = [16, 16], strides = [1, 1]} : vector<16x64xf32> to vector<16x16xf32>
    %cst_15 = arith.constant dense<0.000000e+00> : vector<8x16xf32>
    %40 = tpu.matmul %37, %38, %cst_15 {dimension_numbers = #tpu.dot_dimension_numbers<[1], [1], [0], [0], [0, 0, 1, 0], [], []>} : vector<8x16xf32>, vector<16x16xf32>, vector<8x16xf32> -> vector<8x16xf32>
    %cst_16 = arith.constant dense<0xFF800000> : vector<8xf32>
    %41 = vector.multi_reduction <maximumf>, %40, %cst_16 [1] : vector<8x16xf32> to vector<8xf32>
    %42 = vector.shape_cast %41 : vector<8xf32> to vector<8x1xf32>
    %43 = vector.broadcast %42 : vector<8x1xf32> to vector<8x16xf32>
    %44 = arith.subf %40, %43 : vector<8x16xf32>
    %45 = math.exp %44 : vector<8x16xf32>
    %cst_17 = arith.constant dense<0.000000e+00> : vector<8xf32>
    %46 = vector.multi_reduction <add>, %45, %cst_17 [1] : vector<8x16xf32> to vector<8xf32>
    %47 = vector.shape_cast %46 : vector<8xf32> to vector<8x1xf32>
    %48 = tpu.reciprocal %47 {approx = true} : vector<8x1xf32> -> vector<8x1xf32>
    %49 = vector.broadcast %48 : vector<8x1xf32> to vector<8x16xf32>
    %50 = arith.mulf %45, %49 : vector<8x16xf32>
    %cst_18 = arith.constant dense<0.000000e+00> : vector<8x16xf32>
    %51 = tpu.matmul %50, %39, %cst_18 {dimension_numbers = #tpu.dot_dimension_numbers<[1], [0], [0], [1], [0, 0, 1, 1], [], []>} : vector<8x16xf32>, vector<16x16xf32>, vector<8x16xf32> -> vector<8x16xf32>
    %52 = vector.extract_strided_slice %2 {offsets = [0, 48], sizes = [8, 16], strides = [1, 1]} : vector<8x64xf32> to vector<8x16xf32>
    %53 = vector.extract_strided_slice %4 {offsets = [0, 48], sizes = [16, 16], strides = [1, 1]} : vector<16x64xf32> to vector<16x16xf32>
    %54 = vector.extract_strided_slice %6 {offsets = [0, 48], sizes = [16, 16], strides = [1, 1]} : vector<16x64xf32> to vector<16x16xf32>
    %cst_19 = arith.constant dense<0.000000e+00> : vector<8x16xf32>
    %55 = tpu.matmul %52, %53, %cst_19 {dimension_numbers = #tpu.dot_dimension_numbers<[1], [1], [0], [0], [0, 0, 1, 0], [], []>} : vector<8x16xf32>, vector<16x16xf32>, vector<8x16xf32> -> vector<8x16xf32>
    %cst_20 = arith.constant dense<0xFF800000> : vector<8xf32>
    %56 = vector.multi_reduction <maximumf>, %55, %cst_20 [1] : vector<8x16xf32> to vector<8xf32>
    %57 = vector.shape_cast %56 : vector<8xf32> to vector<8x1xf32>
    %58 = vector.broadcast %57 : vector<8x1xf32> to vector<8x16xf32>
    %59 = arith.subf %55, %58 : vector<8x16xf32>
    %60 = math.exp %59 : vector<8x16xf32>
    %cst_21 = arith.constant dense<0.000000e+00> : vector<8xf32>
    %61 = vector.multi_reduction <add>, %60, %cst_21 [1] : vector<8x16xf32> to vector<8xf32>
    %62 = vector.shape_cast %61 : vector<8xf32> to vector<8x1xf32>
    %63 = tpu.reciprocal %62 {approx = true} : vector<8x1xf32> -> vector<8x1xf32>
    %64 = vector.broadcast %63 : vector<8x1xf32> to vector<8x16xf32>
    %65 = arith.mulf %60, %64 : vector<8x16xf32>
    %cst_22 = arith.constant dense<0.000000e+00> : vector<8x16xf32>
    %66 = tpu.matmul %65, %54, %cst_22 {dimension_numbers = #tpu.dot_dimension_numbers<[1], [0], [0], [1], [0, 0, 1, 1], [], []>} : vector<8x16xf32>, vector<16x16xf32>, vector<8x16xf32> -> vector<8x16xf32>
    %67 = tpu.concatenate %21, %36, %51, %66 in 1 : vector<8x16xf32>, vector<8x16xf32>, vector<8x16xf32>, vector<8x16xf32> -> vector<8x64xf32>
    %c0_23 = arith.constant 0 : index
    %c0_24 = arith.constant 0 : index
    %c0_25 = arith.constant 0 : index
    %68 = vector.load %arg4[%c0_23, %c0_24, %c0_25] : memref<1x8x64xf32, #tpu.memory_space<vmem>>, vector<1x8x64xf32>
    %69 = vector.shape_cast %68 : vector<1x8x64xf32> to vector<8x64xf32>
    %70 = vector.shape_cast %67 : vector<8x64xf32> to vector<1x8x64xf32>
    tpu.vector_store %arg4[%c0_23, %c0_24, %c0_25], %70 {strides = array<i32>} : memref<1x8x64xf32, #tpu.memory_space<vmem>>, vector<1x8x64xf32>,
    return
  }
  func.func @transform_0(%arg0: i32) -> (i32, i32) {
    %c0_i32 = arith.constant 0 : i32
    %c0_i32_0 = arith.constant 0 : i32
    %c0_i32_1 = arith.constant 0 : i32
    return %c0_i32, %c0_i32_0 : i32, i32
  }
  func.func @transform_1(%arg0: i32) -> (i32, i32, i32) {
    %c0_i32 = arith.constant 0 : i32
    %c0_i32_0 = arith.constant 0 : i32
    %c0_i32_1 = arith.constant 0 : i32
    return %arg0, %c0_i32, %c0_i32_0 : i32, i32, i32
  }
  func.func @transform_2(%arg0: i32) -> (i32, i32, i32) {
    %c0_i32 = arith.constant 0 : i32
    %c0_i32_0 = arith.constant 0 : i32
    %c0_i32_1 = arith.constant 0 : i32
    return %arg0, %c0_i32, %c0_i32_0 : i32, i32, i32
  }
  func.func @transform_3(%arg0: i32) -> (i32, i32, i32) {
    %c0_i32 = arith.constant 0 : i32
    %c0_i32_0 = arith.constant 0 : i32
    %c0_i32_1 = arith.constant 0 : i32
    return %arg0, %c0_i32, %c0_i32_0 : i32, i32, i32
  }
}

</mosaic_0001>

<bundles_post_ra>
// kernel: tpu_custom_call.1
= control target key start
LH: loop header
LB: loop body
LE: loop exit
PB: predicated region body
PF: predicated region fallthrough
CT: control target
= control target key end

     0   :  { %8 = vsyncpa [#allocation3], 0  ;;  %s1857_s0 = inlined_call_operand.hbm [shape: f32[8,64], index: 0, kind: input, shape index: {}]   ;;  %s1858_s1 = inlined_call_operand.hbm [shape: f32[2,16,64], index: 1, kind: input, shape index: {}]   ;;  %s1859_s2 = inlined_call_operand.hbm [shape: f32[2,16,64], index: 2, kind: input, shape index: {}]   ;;  %s1860_s3 = inlined_call_operand.hbm [shape: f32[2,8,64], index: 3, kind: output, shape index: {}]  }
   0x1   :  { %9 = vsyncpa [#allocation6], 0 }
   0x2   :  { %11 = vsyncpa [#allocation6 + $0x1], 0 }
   0x3   :  { %12 = vsyncpa [#allocation4], 0 }
   0x4   :  { %14 = vsyncpa [#allocation4 + $0x1], 0  ;;  %s1521_s12 = smov 0   ;;  %s1523_s13 = smov 0  }
   0x5   :  { %s1525_s14 = smov 0   ;;  %s1527_s15 = smov 0  }
   0x6 LB: > { %s1542_s16 = sadd.s32 1, %s1484_s15   ;;  %s48_s17 = sadd.s32 1, %s1480_s14  ;;  %s1484_s15 = sphi %s1527_s15, %s1885_s15   ;;  %s1480_s14 = sphi %s1525_s14, %s1884_s14   ;;  %s1476_s13 = sphi %s1523_s13, %s1883_s13   ;;  %s1472_s12 = sphi %s1521_s12, %s1882_s12  }
   0x7   : > { %s45_s18 = ssub.s32 %s1484_s15, %s1542_s16  ;;  %p55_p0 = scmp.ne.s32.totalorder %s1480_s14, %s1476_s13 }
   0x8   : > { %p46_p1 = scmp.eq.s32.totalorder %s45_s18, 0  ;;  %p56_p2 = scmp.eq.s32.totalorder %s1484_s15, 0 }
   0x9   : > { %p1233_p4 = scmp.lt.s32.totalorder %s1484_s15, 2  ;;  %s148_s20 = sand.u32 1, %s1484_s15  }
   0xa   : > { %s1553_s19 = scalar_select %p46_p1, %s1480_s14, %s48_s17  }
   0xb   : > { %p57_p5 = por %p56_p2, %p55_p0  ;;  %s150_s21 = sand.u32 1, %s1480_s14  }
   0xc   : > { %s1560_s22 = sshll.u32 %s150_s21, 4  ;;  %s1097_s23 = sshll.u32 %s1484_s15, 8 }
   0xd   : > { %s1568_s26 = scalar_lea.hbm %s1858_s1, %s1097_s23  ;;  %s152_s27 = scalar_lea.vmem [#allocation5], %s1560_s22 }
   0xe   : > { %s159_s28 = sshll.u32 %s152_s27, 4  ;;  %p1571_p6 = pnand %p1233_p4, %p57_p5  ;;  %s1575_s28 = int_to_ptr.vmem [resolvable:$true] %s159_s28 }
   0xf   : > { %s1577_s30 = scalar_lea.sflag [#allocation6], %s148_s20  ;;  %s1326_s4 = scalar_lea.hbm %s1568_s26, 256 }
  0x10   : > { %p1327_p7 = scmp.ne.s32.totalorder %s1568_s26, %s1326_s4  ;;  %p1328_p8 = pneg %p1571_p6 }
  0x11   : > { %s1331_s7 = scalar_lea.hbm %s1858_s1, 512  ;;  %p1332_p11 = scmp.lt.u32.totalorder %s1568_s26, %s1858_s1 }
  0x12   : > { %p1329_p9 = pnand %p1328_p8, %p1327_p7  ;;  %p1333_p12 = scmp.lt.u32.totalorder %s1331_s7, %s1326_s4 }
  0x13   : > { %p1335_p1 = scmp.lt.u32.totalorder %s1326_s4, %s1568_s26 }
  0x14   : > { %p1330_p10 = pneg %p1329_p9  ;;  %p1334_p13 = por %p1333_p12, %p1332_p11 }
  0x16   : > { %p1336_p2 = por %p1335_p1, %p1334_p13 }
  0x18   : > { %p1337_p4 = pnand %p1336_p2, %p1330_p10 }
  0x1a   : > { %1340 = shalt.err (!%p1337_p4)
}
  0x1b   : > { %s1341_s10 = scalar_lea.vmem %s1575_s28, 256  ;;  %s1486_s11 = smov [#allocation5]  }
  0x1c   : > { %p1342_p5 = scmp.ne.s32.totalorder %s1575_s28, %s1341_s10  ;;  %s1346_s17 = sshll.u32 %s1486_s11, 4  ;;  %s1347_s17 = int_to_ptr.vmem [resolvable:$false] %s1346_s17 }
  0x1d   : > { %s1348_s18 = scalar_lea.vmem %s1347_s17, 512  ;;  %p1349_p3 = scmp.lt.s32.totalorder %s1575_s28, %s1347_s17 }
  0x1e   : > { %p1344_p7 = pnand %p1342_p5, %p1328_p8  ;;  %p1350_p11 = scmp.lt.s32.totalorder %s1348_s18, %s1341_s10 }
  0x20   : > { %p1345_p9 = pneg %p1344_p7  ;;  %p1351_p12 = por %p1350_p11, %p1349_p3 }
  0x22   : > { %p1352_p13 = pnand %p1351_p12, %p1345_p9 }
  0x24   : > { %1355 = shalt.err (!%p1352_p13)
}
  0x25   : > { %s1487_s20 = smov 128   ;;  %s1488_s21 = smov 8  }
  0x26   : > { %1224 = dma.hbm_to_vmem [thread:$0]  (!%p1571_p6), %s1568_s26, 256, %s1575_s28, %s1577_s30, %s1487_s20, %s1487_s20, %s1488_s21  }
  0x27   : > { %s173_s24 = scalar_lea.vmem [#allocation7], %s1560_s22  ;;  %s1610_s27 = sadd.s32 4294967295, %s1484_s15  }
  0x28   : > { %s180_s25 = sshll.u32 %s173_s24, 4  ;;  %s1062_s4 = sadd.s32 4294967294, %s1484_s15   ;;  %s1643_s25 = int_to_ptr.vmem [resolvable:$true] %s180_s25 }
  0x29   : > { %p61_p3 = scmp.ne.s32.totalorder %s1476_s13, %s1472_s12  ;;  %p1861_p10 = scmp.eq.s32.totalorder %s1610_s27, 0 }
  0x2a   : > { %p111_p1 = scmp.eq.s32.totalorder %s1610_s27, 1  ;;  %p117_p2 = scmp.eq.s32.totalorder %s1062_s4, 1 }
  0x2b   : > { %p1619_p4 = por %p1861_p10, %p61_p3  ;;  %p1063_p5 = scmp.ge.s32.totalorder %s1484_s15, 1 }
  0x2c   : > { %p1627_p7 = por %p111_p1, %p55_p0  ;;  %p1631_p9 = por %p117_p2, %p61_p3 }
  0x2d   : > { %s1866_s5 = scalar_select %p1619_p4, 1, 0 }
  0x2e   : > { %s1867_s22 = scalar_select %p1627_p7, 1, 0 }
  0x2f   : > { %s1868_s26 = scalar_select %p1631_p9, 1, 0 }
  0x30   : > { %p124_p11 = scmp.lt.s32.totalorder %s1484_s15, 3  ;;  %s1641_s7 = scalar_lea.hbm %s1859_s2, %s1097_s23 }
  0x31   : > { %s1489_s9 = smov [#allocation2]   ;;  %s1356_s11 = scalar_lea.hbm %s1641_s7, 256 }
  0x32   : > { %p1645_p0 = pnand %p1063_p5, %p124_p11  ;;  %s1649_s10 = sshll.u32 %s1489_s9, 4  ;;  %s138_s10 = int_to_ptr.vmem [resolvable:$true] %s1649_s10 }
  0x33   : > { %p1357_p13 = scmp.ne.s32.totalorder %s1641_s7, %s1356_s11  ;;  %s1361_s18 = scalar_lea.hbm %s1859_s2, 512 }
  0x34   : > { %s1869_s8 = scalar_select %p1645_p0, 1, 0 }
  0x35   : > { %p1359_p3 = pnand %p1357_p13, %p1328_p8  ;;  %p1362_p2 = scmp.lt.u32.totalorder %s1641_s7, %s1859_s2 }
  0x36   : > { %p1363_p5 = scmp.lt.u32.totalorder %s1361_s18, %s1356_s11  ;;  %p1365_p10 = scmp.lt.u32.totalorder %s1356_s11, %s1641_s7 }
  0x37   : > { %p1360_p1 = pneg %p1359_p3 }
  0x38   : > { %p1364_p11 = por %p1363_p5, %p1362_p2 }
  0x3a   : > { %p1366_p9 = por %p1365_p10, %p1364_p11 }
  0x3c   : > { %p1367_p7 = pnand %p1366_p9, %p1360_p1 }
  0x3e   : > { %1370 = shalt.err (!%p1367_p7)
}
  0x3f   : > { %s1371_s28 = scalar_lea.vmem %s1643_s25, 256  ;;  %s1490_s6 = smov [#allocation7]  }
  0x40   : > { %p1372_p13 = scmp.ne.s32.totalorder %s1643_s25, %s1371_s28  ;;  %s1376_s9 = sshll.u32 %s1490_s6, 4  ;;  %s1377_s9 = int_to_ptr.vmem [resolvable:$false] %s1376_s9 }
  0x41   : > { %s1378_s23 = scalar_lea.vmem %s1377_s9, 512  ;;  %p1379_p4 = scmp.lt.s32.totalorder %s1643_s25, %s1377_s9 }
  0x42   : > { %p1374_p3 = pnand %p1372_p13, %p1328_p8  ;;  %p1380_p2 = scmp.lt.s32.totalorder %s1378_s23, %s1371_s28 }
  0x44   : > { %p1375_p12 = pneg %p1374_p3  ;;  %p1381_p5 = por %p1380_p2, %p1379_p4 }
  0x46   : > { %p1382_p10 = pnand %p1381_p5, %p1375_p12 }
  0x48   : > { %1385 = shalt.err (!%p1382_p10)
}
  0x49   : > { %1227 = dma.hbm_to_vmem [thread:$0]  (!%p1571_p6), %s1641_s7, 256, %s1643_s25, %s1577_s30, %s1487_s20, %s1487_s20, %s1488_s21  }
  0x4a   : > { %p1870_p8 = scmp.eq.s32.totalorder %s1610_s27, 0  ;;  %p1871_p7 = pneg %p1645_p0 }
  0x4b   : > { %s1386_s18 = scalar_lea.hbm %s1857_s0, 128 }
  0x4c   : > { %p1686_p9 = pnand %p1871_p7, %p1870_p8  ;;  %p1387_p4 = scmp.ne.s32.totalorder %s1857_s0, %s1386_s18 }
  0x4d   : > { %p1393_p11 = scmp.lt.u32.totalorder %s1386_s18, %s1857_s0 }
  0x4e   : > { %p1388_p12 = pneg %p1686_p9 }
  0x50   : > { %p1389_p6 = pnand %p1388_p12, %p1387_p4 }
  0x52   : > { %p1390_p1 = pneg %p1389_p6 }
  0x54   : > { %p1395_p13 = pnand %p1393_p11, %p1390_p1 }
  0x56   : > { %1398 = shalt.err (!%p1395_p13)
}
  0x57   : > { %s1399_s21 = scalar_lea.vmem %s138_s10, 128  ;;  %p1407_p10 = scmp.lt.s32.totalorder %s138_s10, %s138_s10 }
  0x58   : > { %p1400_p3 = scmp.ne.s32.totalorder %s138_s10, %s1399_s21  ;;  %p1408_p8 = scmp.lt.s32.totalorder %s1399_s21, %s1399_s21 }
  0x5a   : > { %p1402_p2 = pnand %p1400_p3, %p1388_p12  ;;  %p1409_p7 = por %p1408_p8, %p1407_p10 }
  0x5c   : > { %p1403_p5 = pneg %p1402_p2 }
  0x5e   : > { %p1410_p0 = pnand %p1409_p7, %p1403_p5 }
  0x60   : > { %1413 = shalt.err (!%p1410_p0)
}
  0x61   : > { %1220 = dma.hbm_to_vmem [thread:$0]  (!%p1686_p9), %s1857_s0, 128, %s138_s10, [#allocation3]  }
  0x62   : > { %p1873_p4 = scmp.ne.s32.totalorder %s1869_s8, 0 }
  0x63   : > { %p1874_p6 = scmp.eq.s32.totalorder (!%p1873_p4), %s1610_s27, 0 }
  0x64   : > { %192 = sbr.rel (%p1873_p4) target bundleno = 2594 (0xa22), region = 32 }
  0x6b   : > { %1459 = dma.done.wait (%p1874_p6), [#allocation3], 128   ;;  %p1875_p12 = pmov %p1874_p6 }
  0x6c   : > { %s198_s28 = sand.u32 1, %s1610_s27   ;;  %s1714_s6 = sand.u32 1, %s1476_s13  }
  0x6d   : > { %1461 = vsyncadd (%p1875_p12), [#allocation3], 4294967168  ;;  %s1074_s9 = sshll.u32 %s1714_s6, 4  ;;  %s199_s23 = scalar_lea.sflag [#allocation6], %s198_s28 }
  0x6e   : > { %s202_s10 = scalar_lea.vmem [#allocation5], %s1074_s9  ;;  %p1876_p0 = scmp.ne.s32.totalorder %s1866_s5, 0 }
  0x70   : > { %1463 = dma.done.wait (%p1876_p0), %s199_s23, 512  }
  0x71   : > { %1465 = vsyncadd (%p1876_p0), %s199_s23, 4294966784  ;;  %v1491_v0 = vmov 0.0|0.0   ;;  %vm1492_vm0 = vmmov 0   ;;  %v1493_v1 = vmov 0.0   ;;  %vm245_vm1 = vcmask 130048   ;;  %v241_v2 = vld [vmem:[%s202_s10] sm:$0xff] }
  0x72   : > { %1179 = vmatprep.subr.bf16.mxu0 %v1491_v0  ;;  %1127 = vmatprep.mubr.msk.f32.mxu0 %vm1492_vm0, %v1493_v1  ;;  %v242_v3 = vld [vmem:[%s202_s10 + $0x8] sm:$0xff]  ;;  %vm1731_vm2 = vmpackc.low %vm245_vm1, %vm245_vm1  ;;  %s1494_s5 = smov 112   ;;  %s211_s8 = scalar_lea.vmem [#allocation7], %s1074_s9  ;;  %vm940_vm3 = vcmask 261120   ;;  %vm942_vm4 = vcmask 392192   ;;  %vm944_vm5 = vcmask 523264  }
  0x73   : > { %1183 = vmatprep.subr.bf16.mxu1 %v1491_v0  ;;  %1134 = vmatprep.mubr.msk.f32.mxu1 %vm1492_vm0, %v1493_v1  ;;  %v1180_v5 = vpack.c.bf16 %v242_v3, %v241_v2  ;;  %v239_v6 = vld [vmem:[#allocation2] sm:$0xff]  ;;  %v1745_v11 = vpack.i.bf16 %v242_v3, %v241_v2  ;;  %v243_v17 = vld [vmem:[%s211_s8] sm:$0xff]  ;;  %s1495_s11 = smov 96   ;;  %s1496_s17 = smov 80  }
  0x74   : > { %v1738_v7 = vmul.f32 0.25, %v239_v6  ;;  %v244_v18 = vld [vmem:[%s211_s8 + $0x8] sm:$0xff]  ;;  %s1497_s29 = smov 16   ;;  %s1498_s18 = smov 32  }
  0x75   : > { %1182 = vmatpush3.bf16.xpose.msk.msra.mxu0 %vm1731_vm2, %v1180_v5  ;;  %1281 = vrot.lane.b32.xlu1 %v1745_v11, %s1494_s5  ;;  %v1184_v19 = vpack.c.bf16 %v244_v18, %v243_v17  ;;  %v1767_v33 = vpack.i.bf16 %v244_v18, %v243_v17  ;;  %s1499_s24 = smov 48   ;;  %s1076_s4 = sshll.u32 %s1714_s6, 3 }
  0x76   : > { %1190 = vmatprep.subr.bf16.mxu0 %v1491_v0  ;;  %s1094_s30 = sshll.u32 %s1610_s27, 7  ;;  %s238_s20 = scalar_lea.vmem [#allocation8], %s1076_s4 }
  0x77   : > { %1185 = vmatpush3.bf16.msra.mxu1 %v1184_v19  ;;  %s960_s21 = sshll.u32 %s238_s20, 4  ;;  %s1813_s28 = scalar_lea.hbm %s1860_s3, %s1094_s30  ;;  %s1815_s21 = int_to_ptr.vmem [resolvable:$true] %s960_s21 }
  0x78   : > { %1186 = vmatprep.subr.bf16.mxu1 %v1491_v0  ;;  %s947_s27 = scalar_lea.sflag [#allocation4], %s1714_s6  ;;  %s1414_s9 = scalar_lea.vmem %s1815_s21, 128 }
  0x79   : > { %409 = vrot.lane.b32.xlu1 %v1738_v7, %s1494_s5  ;;  %p1415_p9 = scmp.ne.s32.totalorder %s1815_s21, %s1414_s9  ;;  %p1879_p1 = scmp.ne.s32.totalorder %s1867_s22, 0 }
  0x7a   : > { %s1500_s23 = smov [#allocation8]  }
  0x7b   : > { %p1416_p11 = pnand %p1415_p9, %p1879_p1  ;;  %s1418_s10 = sshll.u32 %s1500_s23, 4  ;;  %s1419_s10 = int_to_ptr.vmem [resolvable:$false] %s1418_s10 }
  0x7c   : > { %1128 = vmatmul.mubr.msk.f32.vlgmr.msra.gmra.mrb[0].mxu0 %vm245_vm1, %v1738_v7  ;;  %p1421_p3 = scmp.lt.s32.totalorder %s1815_s21, %s1419_s10 }
  0x7d   : > { %1148 = vmatprep.mubr.msk.f32.mxu0 %vm1492_vm0, %v1493_v1  ;;  %p1417_p13 = pneg %p1416_p11 }
  0xe7   : > { %v1282_v21 = vpop.permute.xlu1 %1281 }
  0xe8   : > { %v1284_v22 = vunpack.i.h.bf16 %v1282_v21  ;;  %v1283_v23 = vunpack.i.l.bf16 %v1282_v21 }
  0xea   : > { %v1187_v25 = vpack.c.bf16 %v1284_v22, %v1283_v23 }
  0xeb   : > { %v410_v27 = vpop.permute.xlu1 %409 }
 0x14f   : > { %v321_v8 = vpop.f32.mrb[0].mxu0 }
 0x150   : > { %v1129_v9 = vpop.f32.mrb[1].mxu0  ;;  %v325_v10 = vsel %vm245_vm1, %v321_v8, -inf }
 0x151   : > { %326 = vmax.xlane.f32.xlu0 %v325_v10 }
 0x1de   : > { %v327_v12 = vpop.xlane.xlu0 %326 }
 0x1df   : > { %v328_v13 = vsub.f32 %v321_v8, %v327_v12 }
 0x1e1   : > { %v329_v14 = vmul.f32 1.442695, %v328_v13 }
 0x1e3   : > { %1310 = vpow2.f32 %v329_v14 }
 0x1ed   : > { %v1311_v15 = vpop.eup %1310 }
 0x1ee   : > { %v331_v16 = vsel %vm245_vm1, %v1311_v15, 0.0 }
 0x1ef   : > { %332 = vadd.xlane.f32.xlu0 %v331_v16 }
 0x27c   : > { %v333_v20 = vpop.xlane.xlu0 %332 }
 0x27d   : > { %1312 = vrcp.f32 %v333_v20 }
 0x287   : > { %v1313_v24 = vpop.eup %1312 }
 0x288   : > { %v335_v26 = vmul.f32 %v1313_v24, %v1311_v15 }
 0x28a   : > { %1135 = vmatmul.mubr.msk.f32.vlgmr.msra.gmra.mrb[0].mxu1 %vm245_vm1, %v335_v26 }
 0x28b   : > { %1189 = vmatpush3.bf16.xpose.msk.msra.mxu1 %vm1731_vm2, %v1187_v25  ;;  %1141 = vmatprep.mubr.msk.f32.mxu1 %vm1492_vm0, %v1493_v1 }
 0x28c   : > { %1197 = vmatprep.subr.bf16.mxu1 %v1491_v0 }
 0x292   : > { %1142 = vmatmul.mubr.msk.f32.vlgmr.msra.gmra.mrb[2].mxu1 %vm245_vm1, %v410_v27 }
 0x293   : > { %1162 = vmatprep.mubr.msk.f32.mxu1 %vm1492_vm0, %v1493_v1 }
 0x35d   : > { %v1764_v28 = vpop.f32.mrb[0].mxu1 }
 0x35e   : > { %v1136_v29 = vpop.f32.mrb[1].mxu1 }
 0x365   : > { %v487_v30 = vpop.f32.mrb[2].mxu1 }
 0x366   : > { %v1143_v31 = vpop.f32.mrb[3].mxu1  ;;  %v491_v32 = vsel %vm245_vm1, %v487_v30, -inf }
 0x367   : > { %492 = vmax.xlane.f32.xlu0 %v491_v32 }
 0x37d   : > { %1286 = vrot.lane.b32.xlu0 %v1767_v33, %s1494_s5  ;;  %s1420_s5 = scalar_lea.vmem %s1419_s10, 256 }
 0x37e   : > { %p1422_p2 = scmp.lt.s32.totalorder %s1420_s5, %s1414_s9 }
 0x380   : > { %p1423_p5 = por %p1422_p2, %p1421_p3 }
 0x381   : > { %1291 = vrot.lane.b32.xlu0 %v1745_v11, %s1495_s11 }
 0x382   : > { %p1424_p10 = pnand %p1423_p5, %p1417_p13 }
 0x385   : > { %583 = vrot.lane.b32.xlu0 %v1738_v7, %s1495_s11 }
 0x3f4   : > { %v493_v34 = vpop.xlane.xlu0 %492 }
 0x3f5   : > { %v494_v35 = vsub.f32 %v487_v30, %v493_v34 }
 0x3f7   : > { %v495_v36 = vmul.f32 1.442695, %v494_v35 }
 0x3f8   : > { %v1287_v39 = vpop.permute.xlu0 %1286 }
 0x3f9   : > { %1314 = vpow2.f32 %v495_v36  ;;  %v1289_v40 = vunpack.i.h.bf16 %v1287_v39  ;;  %v1288_v41 = vunpack.i.l.bf16 %v1287_v39 }
 0x3fb   : > { %v1191_v42 = vpack.c.bf16 %v1289_v40, %v1288_v41 }
 0x3fc   : > { %v1292_v44 = vpop.permute.xlu0 %1291 }
 0x3fd   : > { %1192 = vmatpush3.bf16.msra.mxu0 %v1191_v42  ;;  %v1294_v45 = vunpack.i.h.bf16 %v1292_v44  ;;  %v1293_v46 = vunpack.i.l.bf16 %v1292_v44 }
 0x3fe   : > { %1193 = vmatprep.subr.bf16.mxu0 %v1491_v0 }
 0x3ff   : > { %v1194_v48 = vpack.c.bf16 %v1294_v45, %v1293_v46 }
 0x400   : > { %v584_v50 = vpop.permute.xlu0 %583 }
 0x403   : > { %v1315_v37 = vpop.eup %1314 }
 0x404   : > { %v497_v38 = vsel %vm245_vm1, %v1315_v37, 0.0 }
 0x405   : > { %498 = vadd.xlane.f32.xlu1 %v497_v38 }
 0x416   : > { %1296 = vrot.lane.b32.xlu1 %v1767_v33, %s1495_s11 }
 0x41a   : > { %1301 = vrot.lane.b32.xlu1 %v1745_v11, %s1496_s17 }
 0x492   : > { %v499_v43 = vpop.xlane.xlu1 %498 }
 0x493   : > { %1316 = vrcp.f32 %v499_v43 }
 0x496   : > { %v1297_v56 = vpop.permute.xlu1 %1296 }
 0x497   : > { %v1299_v57 = vunpack.i.h.bf16 %v1297_v56  ;;  %v1298_v58 = vunpack.i.l.bf16 %v1297_v56 }
 0x499   : > { %v1198_v59 = vpack.c.bf16 %v1299_v57, %v1298_v58 }
 0x49a   : > { %v1302_v3 = vpop.permute.xlu1 %1301 }
 0x49b   : > { %1199 = vmatpush3.bf16.msra.mxu1 %v1198_v59  ;;  %v1304_v6 = vunpack.i.h.bf16 %v1302_v3  ;;  %v1303_v8 = vunpack.i.l.bf16 %v1302_v3 }
 0x49c   : > { %1200 = vmatprep.subr.bf16.mxu1 %v1491_v0 }
 0x49d   : > { %v1317_v47 = vpop.eup %1316  ;;  %v1201_v11 = vpack.c.bf16 %v1304_v6, %v1303_v8 }
 0x49e   : > { %v501_v49 = vmul.f32 %v1317_v47, %v1315_v37 }
 0x4a0   : > { %1149 = vmatmul.mubr.msk.f32.vlgmr.msra.gmra.mrb[2].mxu0 %vm245_vm1, %v501_v49 }
 0x4a1   : > { %1196 = vmatpush3.bf16.xpose.msk.msra.mxu0 %vm1731_vm2, %v1194_v48  ;;  %1155 = vmatprep.mubr.msk.f32.mxu0 %vm1492_vm0, %v1493_v1 }
 0x4a2   : > { %1204 = vmatprep.subr.bf16.mxu0 %v1491_v0 }
 0x4a8   : > { %1156 = vmatmul.mubr.msk.f32.vlgmr.msra.gmra.mrb[4].mxu0 %vm245_vm1, %v584_v50 }
 0x4a9   : > { %1176 = vmatprep.mubr.msk.f32.mxu0 %vm1492_vm0, %v1493_v1 }
 0x573   : > { %v579_v51 = vpop.f32.mrb[2].mxu0 }
 0x574   : > { %v1150_v52 = vpop.f32.mrb[3].mxu0 }
 0x57b   : > { %v661_v53 = vpop.f32.mrb[4].mxu0 }
 0x57c   : > { %v1157_v54 = vpop.f32.mrb[5].mxu0  ;;  %v665_v55 = vsel %vm245_vm1, %v661_v53, -inf }
 0x57d   : > { %666 = vmax.xlane.f32.xlu0 %v665_v55 }
 0x60a   : > { %v667_v60 = vpop.xlane.xlu0 %666 }
 0x60b   : > { %v668_v61 = vsub.f32 %v661_v53, %v667_v60 }
 0x60d   : > { %v669_v62 = vmul.f32 1.442695, %v668_v61 }
 0x60f   : > { %1318 = vpow2.f32 %v669_v62 }
 0x619   : > { %v1319_v63 = vpop.eup %1318 }
 0x61a   : > { %v671_v2 = vsel %vm245_vm1, %v1319_v63, 0.0 }
 0x61b   : > { %672 = vadd.xlane.f32.xlu1 %v671_v2 }
 0x62c   : > { %755 = vrot.lane.b32.xlu1 %v1738_v7, %s1496_s17 }
 0x6a8   : > { %v673_v5 = vpop.xlane.xlu1 %672 }
 0x6a9   : > { %1320 = vrcp.f32 %v673_v5 }
 0x6ac   : > { %v756_v0 = vpop.permute.xlu1 %755 }
 0x6b3   : > { %v1321_v9 = vpop.eup %1320 }
 0x6b4   : > { %v675_v10 = vmul.f32 %v1321_v9, %v1319_v63 }
 0x6b6   : > { %1163 = vmatmul.mubr.msk.f32.vlgmr.msra.gmra.mrb[4].mxu1 %vm245_vm1, %v675_v10 }
 0x6b7   : > { %1203 = vmatpush3.bf16.xpose.msk.msra.mxu1 %vm1731_vm2, %v1201_v11  ;;  %1169 = vmatprep.mubr.msk.f32.mxu1 %vm1492_vm0, %v1493_v1 }
 0x6be   : > { %1170 = vmatmul.mubr.msk.f32.vlgmr.msra.gmra.mrb[6].mxu1 %vm245_vm1, %v756_v0 }
 0x789   : > { %v751_v7 = vpop.f32.mrb[4].mxu1 }
 0x78a   : > { %v1164_v12 = vpop.f32.mrb[5].mxu1 }
 0x791   : > { %v833_v13 = vpop.f32.mrb[6].mxu1 }
 0x792   : > { %v1171_v14 = vpop.f32.mrb[7].mxu1  ;;  %v837_v15 = vsel %vm245_vm1, %v833_v13, -inf }
 0x793   : > { %838 = vmax.xlane.f32.xlu0 %v837_v15 }
 0x7a9   : > { %1306 = vrot.lane.b32.xlu0 %v1767_v33, %s1496_s17 }
 0x7ad   : > { %928 = vrot.lane.b32.xlu0 %v579_v51, %s1497_s29 }
 0x7b1   : > { %932 = vrot.lane.b32.xlu0 %v751_v7, %s1498_s18 }
 0x820   : > { %v839_v4 = vpop.xlane.xlu0 %838 }
 0x821   : > { %v840_v16 = vsub.f32 %v833_v13, %v839_v4 }
 0x823   : > { %v841_v1 = vmul.f32 1.442695, %v840_v16 }
 0x824   : > { %v1307_v17 = vpop.permute.xlu0 %1306 }
 0x825   : > { %1322 = vpow2.f32 %v841_v1  ;;  %v1309_v18 = vunpack.i.h.bf16 %v1307_v17  ;;  %v1308_v19 = vunpack.i.l.bf16 %v1307_v17 }
 0x827   : > { %v1205_v20 = vpack.c.bf16 %v1309_v18, %v1308_v19 }
 0x828   : > { %v929_v29 = vpop.permute.xlu0 %928 }
 0x829   : > { %1206 = vmatpush3.bf16.msra.mxu0 %v1205_v20  ;;  %v939_v31 = vsel %vm245_vm1, %v1764_v28, %v929_v29 }
 0x82c   : > { %v933_v30 = vpop.permute.xlu0 %932 }
 0x82d   : > { %v941_v32 = vsel %vm940_vm3, %v939_v31, %v933_v30 }
 0x82f   : > { %v1323_v21 = vpop.eup %1322 }
 0x830   : > { %v843_v22 = vsel %vm245_vm1, %v1323_v21, 0.0 }
 0x831   : > { %844 = vadd.xlane.f32.xlu1 %v843_v22 }
 0x8be   : > { %v845_v23 = vpop.xlane.xlu1 %844 }
 0x8bf   : > { %1324 = vrcp.f32 %v845_v23 }
 0x8c9   : > { %v1325_v24 = vpop.eup %1324 }
 0x8ca   : > { %v847_v25 = vmul.f32 %v1325_v24, %v1323_v21 }
 0x8cc   : > { %1177 = vmatmul.mubr.msk.f32.vlgmr.msra.gmra.mrb[6].mxu0 %vm245_vm1, %v847_v25 }
 0x99f   : > { %v923_v26 = vpop.f32.mrb[6].mxu0 }
 0x9a0   : > { %936 = vrot.lane.b32.xlu0 %v923_v26, %s1499_s24  ;;  %v1178_v27 = vpop.f32.mrb[7].mxu0 }
 0xa12   : > { %v937_v33 = vpop.permute.xlu0 %936 }
 0xa13   : > { %v943_v34 = vsel %vm942_vm4, %v941_v32, %v937_v33 }
 0xa14   : > { %945 = vst.msk [vmem:[%s238_s20] sm:$0xff] %vm944_vm5, %v943_v34 }
 0xa15   : > { %1427 = shalt.err (!%p1424_p10)
}
 0xa16   : > { %s1428_s6 = scalar_lea.hbm %s1813_s28, 128  ;;  %s1432_s17 = scalar_lea.hbm %s1860_s3, 256 }
 0xa17   : > { %p1429_p8 = scmp.ne.s32.totalorder %s1813_s28, %s1428_s6  ;;  %p1433_p6 = scmp.lt.u32.totalorder %s1813_s28, %s1860_s3 }
 0xa18   : > { %p1434_p12 = scmp.lt.u32.totalorder %s1432_s17, %s1428_s6  ;;  %p1436_p9 = scmp.lt.u32.totalorder %s1428_s6, %s1813_s28 }
 0xa19   : > { %p1430_p7 = pnand %p1429_p8, %p1879_p1 }
 0xa1a   : > { %p1435_p0 = por %p1434_p12, %p1433_p6 }
 0xa1b   : > { %p1431_p4 = pneg %p1430_p7 }
 0xa1c   : > { %p1437_p11 = por %p1436_p9, %p1435_p0 }
 0xa1e   : > { %p1438_p13 = pnand %p1437_p11, %p1431_p4 }
 0xa20   : > { %1441 = shalt.err (!%p1438_p13)
}
 0xa21   : > { %1215 = dma.vmem_to_hbm [thread:$0]  (%p1879_p1), %s1815_s21, 128, %s1813_s28, %s947_s27  }
 0xa22 PF: > { %s972_s24 = sand.u32 1, %s1472_s12   ;;  %p1880_p3 = scmp.ne.s32.totalorder %s1868_s26, 0 }
 0xa23   : > { %p1881_p2 = scmp.ge.s32.totalorder %s1484_s15, 2  ;;  %s973_s4 = scalar_lea.sflag [#allocation4], %s972_s24 }
 0xa25   : > { %p1229_p5 = pnand %p1881_p2, %p1880_p3 }
 0xa27   : > { %1467 = dma.done.wait (!%p1229_p5), %s973_s4, 128  }
 0xa28   : > { %1469 = vsyncadd (!%p1229_p5), %s973_s4, 4294967168  ;;  %p17_p10 = scmp.ge.s32.totalorder %s1542_s16, 4   ;;  %s1882_s12 = smov %s1476_s13 }
 0xa29   : > { %s1883_s13 = smov %s1480_s14  ;;  %s1884_s14 = smov %s1553_s19 }
 0xa2a   : > { %s1885_s15 = smov %s1542_s16  ;;  %19 = sbr.rel (!%p17_p10) target bundleno = 6 (0x6), region = 93 }
 0xa31   :  { %978 = vsyncpa [#allocation3], 1 }
 0xa32   :  { %980 = vsyncpa [#allocation3 + $0x1], 1 }
 0xa33   :  { %981 = vsyncpa [#allocation6], 1 }
 0xa34   :  { %983 = vsyncpa [#allocation6 + $0x1], 1 }
 0xa35   :  { %984 = vsyncpa [#allocation4], 1 }
 0xa36   :  { %986 = vsyncpa [#allocation4 + $0x1], 1 }

</bundles_post_ra>
